<compile_context>
chip_gen: v5e
topology: v5e:2x2
jax: 0.10.0
libtpu: 0.0.40
codegen_flags: <defaults>
</compile_context>

<pallas_src>
import functools
import math

import jax
import jax.numpy as jnp
from jax.experimental import pallas as pl
from jax.experimental.pallas import tpu as pltpu


def _complex_conv2d_kernel(w_ref, b_ref, x_ref, o_ref, *, offs, m_chunk):
    # w_ref : (KH*KW, 2*Cout, 2*Cin)  per-tap block weights (complex combine baked in)
    # b_ref : (2*Cout, 1)             combined bias
    # x_ref : (2*Cin, L_chunk)        flattened padded input rows for this chunk (+halo)
    # o_ref : (2*Cout, M_chunk)       lane-dense output chunk (M_chunk % 128 == 0)
    acc = None
    for t, off in enumerate(offs):                      # static Python loop over taps
        slab = x_ref[:, pl.ds(off, m_chunk)]            # static, contiguous lane slice
        part = jnp.dot(w_ref[t], slab, preferred_element_type=jnp.float32)
        acc = part if acc is None else acc + part       # MXU accumulate (MRB on v7x)
    o_ref[...] = acc + b_ref[...]                       # bias broadcast over lanes


def complex_conv2d(x, w_re, w_im, b_re, b_im, *, stride=1, padding=0, dilation=1,
                   groups=1, use_bf16=False):
    """Complex 2D convolution matching the PyTorch ComplexConv2d forward.

    x   : (N, Cin, H, W, 2) float32, trailing axis = (real, imag)
    w_* : (Cout, Cin, KH, KW) float32 (PyTorch Conv2d weight layout)
    b_* : (Cout,) float32 or None
    returns (N, Cout, H_out, W_out, 2) float32
    """
    assert groups == 1  # TODO(synk): grouped complex conv not implemented.
    N, Cin, H, W, two = x.shape
    assert two == 2
    Cout, Cin_w, KH, KW = w_re.shape
    assert Cin_w == Cin and w_im.shape == w_re.shape

    Cin2, Cout2 = 2 * Cin, 2 * Cout
    H_pad, W_pad = H + 2 * padding, W + 2 * padding
    H_dense = H_pad - dilation * (KH - 1)       # stride-1 output extents
    W_dense = W_pad - dilation * (KW - 1)
    assert H_dense > 0 and W_dense > 0
    H_out = (H_dense - 1) // stride + 1
    W_out = (W_dense - 1) // stride + 1

    # Row-chunking: >=2 grid steps per image so each v7x TensorCore gets >=2 steps even
    # at tiny batch, and per-chunk input DMAs can pipeline behind compute.
    R = 2 if H_dense >= 2 else 1
    rc = -(-H_dense // R)                       # dense output rows per chunk
    R = -(-H_dense // rc)

    # Wide-row width: smallest >= W_pad such that rc*W_row is a multiple of 128 ->
    # unmasked, lane-dense output stores. Extra columns are junk and get cropped.
    align = 128 // math.gcd(rc, 128)
    W_row = -(-W_pad // align) * align
    M_chunk = rc * W_row

    rows_in = rc + dilation * (KH - 1) + 1      # halo rows (+1 slack: junk cols read past row end)
    L_chunk = rows_in * W_row
    Hrows_total = (R - 1) * rc + rows_in

    offs = [kh * dilation * W_row + kw * dilation
            for kh in range(KH) for kw in range(KW)]

    # ---- wrapper glue ----
    in_dtype = jnp.bfloat16 if use_bf16 else jnp.float32
    # One pad (spatial + wide-row + chunk slack merged); complex axis -> channel blocks
    # [real | imag]; then overlapping row-chunks (zero-filled slack, so junk lanes read
    # by the matmul stay finite).
    xp = jnp.pad(x, ((0, 0), (0, 0),
                     (padding, Hrows_total - H - padding),
                     (padding, W_row - W - padding),
                     (0, 0)))
    xs = jnp.moveaxis(xp, -1, 1).reshape(N, Cin2, Hrows_total, W_row)
    xs = jnp.stack([xs[:, :, r * rc: r * rc + rows_in] for r in range(R)], axis=1)
    xs = xs.reshape(N, R, Cin2, L_chunk).astype(in_dtype)

    # Block weight:  rows 0..Cout-1 (real out)   = [ W_re | -W_im ]
    #                rows Cout..2Cout (imag out) = [ W_im |  W_re ]
    # re-laid out per tap as (KH*KW, 2Cout, 2Cin).
    wc = jnp.concatenate(
        [jnp.concatenate([w_re, -w_im], axis=1),
         jnp.concatenate([w_im, w_re], axis=1)], axis=0)        # (2Cout, 2Cin, KH, KW)
    w_taps = jnp.transpose(wc, (2, 3, 0, 1)).reshape(KH * KW, Cout2, Cin2)
    w_taps = w_taps.astype(in_dtype)

    if b_re is None:
        bc = jnp.zeros((Cout2, 1), jnp.float32)
    else:
        bc = jnp.concatenate([b_re - b_im, b_re + b_im]).reshape(Cout2, 1)
    bc = bc.astype(jnp.float32)

    kernel = functools.partial(_complex_conv2d_kernel, offs=offs, m_chunk=M_chunk)

    out_wide = pl.pallas_call(
        kernel,
        out_shape=jax.ShapeDtypeStruct((N, Cout2, R * M_chunk), jnp.float32),
        grid_spec=pltpu.PrefetchScalarGridSpec(
            num_scalar_prefetch=0,
            grid=(N, R),
            in_specs=[
                pl.BlockSpec((KH * KW, Cout2, Cin2), lambda n, r: (0, 0, 0)),  # grid-invariant
                pl.BlockSpec((Cout2, 1), lambda n, r: (0, 0)),                 # grid-invariant
                pl.BlockSpec((None, None, Cin2, L_chunk), lambda n, r: (n, r, 0, 0)),
            ],
            out_specs=pl.BlockSpec((None, Cout2, M_chunk), lambda n, r: (n, 0, r)),
        ),
        compiler_params=pltpu.CompilerParams(
            dimension_semantics=("parallel", "parallel")),
    )(w_taps, bc, xs)

    # Crop junk rows/cols, apply stride by subsampling the dense output, move the
    # complex-block axis to the trailing position.
    out = out_wide.reshape(N, 2, Cout, R * rc, W_row)
    out = out[:, :, :, :H_dense:stride, :W_dense:stride]
    return jnp.moveaxis(out, 1, -1)


if __name__ == "__main__":
    # ComplexConv2d(4, 4, kernel_size=3, stride=1, padding=1, bias=True)
    N, Cin, Cout, K, H, W = 2, 4, 4, 3, 16, 16
    stride, padding, dilation = 1, 1, 1

    key = jax.random.PRNGKey(0)
    kx, kwr, kwi, kbr, kbi = jax.random.split(key, 5)
    x = jax.random.normal(kx, (N, Cin, H, W, 2), dtype=jnp.float32)
    w_re = jax.random.normal(kwr, (Cout, Cin, K, K), dtype=jnp.float32) * 0.1
    w_im = jax.random.normal(kwi, (Cout, Cin, K, K), dtype=jnp.float32) * 0.1
    b_re = jax.random.normal(kbr, (Cout,), dtype=jnp.float32) * 0.1
    b_im = jax.random.normal(kbi, (Cout,), dtype=jnp.float32) * 0.1

    out = complex_conv2d(x, w_re, w_im, b_re, b_im,
                         stride=stride, padding=padding, dilation=dilation)
    out = jax.block_until_ready(out)

    # Pure-JAX reference of the PyTorch forward.
    def conv_ref(a, w, b):
        y = jax.lax.conv_general_dilated(
            a, w, window_strides=(stride, stride),
            padding=((padding, padding), (padding, padding)),
            rhs_dilation=(dilation, dilation),
            dimension_numbers=("NCHW", "OIHW", "NCHW"))
        return y + b[None, :, None, None]

    real_ref = conv_ref(x[..., 0], w_re, b_re) - conv_ref(x[..., 1], w_im, b_im)
    imag_ref = conv_ref(x[..., 1], w_re, b_re) + conv_ref(x[..., 0], w_im, b_im)
    ref = jnp.stack((real_ref, imag_ref), axis=-1)

    H_out = (H + 2 * padding - dilation * (K - 1) - 1) // stride + 1
    assert out.shape == (N, Cout, H_out, H_out, 2), out.shape
    assert jnp.allclose(out, ref, atol=1e-4, rtol=1e-4), \
        float(jnp.max(jnp.abs(out - ref)))
    print("KERNEL_OK")
</pallas_src>

<mosaic_0001>
module attributes {stable_mosaic.version = 11 : i64} {
  func.func @_complex_conv2d_kernel(%arg0: i32, %arg1: i32, %arg2: memref<9x8x8xf32, #tpu.memory_space<vmem>>, %arg3: memref<8x1xf32, #tpu.memory_space<vmem>>, %arg4: memref<1x1x8x352xf32, #tpu.memory_space<vmem>>, %arg5: memref<1x8x256xf32, #tpu.memory_space<vmem>>) attributes {dimension_semantics = [#tpu.dimension_semantics<parallel>, #tpu.dimension_semantics<parallel>], iteration_bounds = array<i64: 2, 2>, scalar_prefetch = 0 : i64, scratch_operands = 0 : i64, tpu.core_type = #tpu.core_type<tc>, window_params = [{pipeline_mode = #tpu.pipeline_mode<synchronous>, transform_indices = @transform_0, window_bounds = array<i64: 9, 8, 8>}, {pipeline_mode = #tpu.pipeline_mode<synchronous>, transform_indices = @transform_1, window_bounds = array<i64: 8, 1>}, {transform_indices = @transform_2, window_bounds = array<i64: 1, 1, 8, 352>}, {transform_indices = @transform_3, window_bounds = array<i64: 1, 8, 256>}]} {
    %c0 = arith.constant 0 : index
    %c0_0 = arith.constant 0 : index
    %c0_1 = arith.constant 0 : index
    %c0_2 = arith.constant 0 : index
    %0 = vector.load %arg4[%c0, %c0_0, %c0_1, %c0_2] : memref<1x1x8x352xf32, #tpu.memory_space<vmem>>, vector<1x1x8x256xf32>
    %1 = vector.shape_cast %0 : vector<1x1x8x256xf32> to vector<8x256xf32>
    %c0_3 = arith.constant 0 : index
    %c0_4 = arith.constant 0 : index
    %c0_5 = arith.constant 0 : index
    %2 = vector.load %arg2[%c0_3, %c0_4, %c0_5] : memref<9x8x8xf32, #tpu.memory_space<vmem>>, vector<1x8x8xf32>
    %3 = vector.shape_cast %2 : vector<1x8x8xf32> to vector<8x8xf32>
    %cst = arith.constant dense<0.000000e+00> : vector<8x256xf32>
    %4 = tpu.matmul %3, %1, %cst {dimension_numbers = #tpu.dot_dimension_numbers<[1], [0], [0], [1], [0, 0, 1, 1], [], []>} : vector<8x8xf32>, vector<8x256xf32>, vector<8x256xf32> -> vector<8x256xf32>
    %c0_6 = arith.constant 0 : index
    %c0_7 = arith.constant 0 : index
    %c0_8 = arith.constant 0 : index
    %c1 = arith.constant 1 : index
    %5 = vector.load %arg4[%c0_6, %c0_7, %c0_8, %c1] : memref<1x1x8x352xf32, #tpu.memory_space<vmem>>, vector<1x1x8x256xf32>
    %6 = vector.shape_cast %5 : vector<1x1x8x256xf32> to vector<8x256xf32>
    %c1_9 = arith.constant 1 : index
    %c0_10 = arith.constant 0 : index
    %c0_11 = arith.constant 0 : index
    %7 = vector.load %arg2[%c1_9, %c0_10, %c0_11] : memref<9x8x8xf32, #tpu.memory_space<vmem>>, vector<1x8x8xf32>
    %8 = vector.shape_cast %7 : vector<1x8x8xf32> to vector<8x8xf32>
    %cst_12 = arith.constant dense<0.000000e+00> : vector<8x256xf32>
    %9 = tpu.matmul %8, %6, %cst_12 {dimension_numbers = #tpu.dot_dimension_numbers<[1], [0], [0], [1], [0, 0, 1, 1], [], []>} : vector<8x8xf32>, vector<8x256xf32>, vector<8x256xf32> -> vector<8x256xf32>
    %10 = arith.addf %4, %9 : vector<8x256xf32>
    %c0_13 = arith.constant 0 : index
    %c0_14 = arith.constant 0 : index
    %c0_15 = arith.constant 0 : index
    %c2 = arith.constant 2 : index
    %11 = vector.load %arg4[%c0_13, %c0_14, %c0_15, %c2] : memref<1x1x8x352xf32, #tpu.memory_space<vmem>>, vector<1x1x8x256xf32>
    %12 = vector.shape_cast %11 : vector<1x1x8x256xf32> to vector<8x256xf32>
    %c2_16 = arith.constant 2 : index
    %c0_17 = arith.constant 0 : index
    %c0_18 = arith.constant 0 : index
    %13 = vector.load %arg2[%c2_16, %c0_17, %c0_18] : memref<9x8x8xf32, #tpu.memory_space<vmem>>, vector<1x8x8xf32>
    %14 = vector.shape_cast %13 : vector<1x8x8xf32> to vector<8x8xf32>
    %cst_19 = arith.constant dense<0.000000e+00> : vector<8x256xf32>
    %15 = tpu.matmul %14, %12, %cst_19 {dimension_numbers = #tpu.dot_dimension_numbers<[1], [0], [0], [1], [0, 0, 1, 1], [], []>} : vector<8x8xf32>, vector<8x256xf32>, vector<8x256xf32> -> vector<8x256xf32>
    %16 = arith.addf %10, %15 : vector<8x256xf32>
    %c0_20 = arith.constant 0 : index
    %c0_21 = arith.constant 0 : index
    %c0_22 = arith.constant 0 : index
    %c32 = arith.constant 32 : index
    %17 = vector.load %arg4[%c0_20, %c0_21, %c0_22, %c32] : memref<1x1x8x352xf32, #tpu.memory_space<vmem>>, vector<1x1x8x256xf32>
    %18 = vector.shape_cast %17 : vector<1x1x8x256xf32> to vector<8x256xf32>
    %c3 = arith.constant 3 : index
    %c0_23 = arith.constant 0 : index
    %c0_24 = arith.constant 0 : index
    %19 = vector.load %arg2[%c3, %c0_23, %c0_24] : memref<9x8x8xf32, #tpu.memory_space<vmem>>, vector<1x8x8xf32>
    %20 = vector.shape_cast %19 : vector<1x8x8xf32> to vector<8x8xf32>
    %cst_25 = arith.constant dense<0.000000e+00> : vector<8x256xf32>
    %21 = tpu.matmul %20, %18, %cst_25 {dimension_numbers = #tpu.dot_dimension_numbers<[1], [0], [0], [1], [0, 0, 1, 1], [], []>} : vector<8x8xf32>, vector<8x256xf32>, vector<8x256xf32> -> vector<8x256xf32>
    %22 = arith.addf %16, %21 : vector<8x256xf32>
    %c0_26 = arith.constant 0 : index
    %c0_27 = arith.constant 0 : index
    %c0_28 = arith.constant 0 : index
    %c33 = arith.constant 33 : index
    %23 = vector.load %arg4[%c0_26, %c0_27, %c0_28, %c33] : memref<1x1x8x352xf32, #tpu.memory_space<vmem>>, vector<1x1x8x256xf32>
    %24 = vector.shape_cast %23 : vector<1x1x8x256xf32> to vector<8x256xf32>
    %c4 = arith.constant 4 : index
    %c0_29 = arith.constant 0 : index
    %c0_30 = arith.constant 0 : index
    %25 = vector.load %arg2[%c4, %c0_29, %c0_30] : memref<9x8x8xf32, #tpu.memory_space<vmem>>, vector<1x8x8xf32>
    %26 = vector.shape_cast %25 : vector<1x8x8xf32> to vector<8x8xf32>
    %cst_31 = arith.constant dense<0.000000e+00> : vector<8x256xf32>
    %27 = tpu.matmul %26, %24, %cst_31 {dimension_numbers = #tpu.dot_dimension_numbers<[1], [0], [0], [1], [0, 0, 1, 1], [], []>} : vector<8x8xf32>, vector<8x256xf32>, vector<8x256xf32> -> vector<8x256xf32>
    %28 = arith.addf %22, %27 : vector<8x256xf32>
    %c0_32 = arith.constant 0 : index
    %c0_33 = arith.constant 0 : index
    %c0_34 = arith.constant 0 : index
    %c34 = arith.constant 34 : index
    %29 = vector.load %arg4[%c0_32, %c0_33, %c0_34, %c34] : memref<1x1x8x352xf32, #tpu.memory_space<vmem>>, vector<1x1x8x256xf32>
    %30 = vector.shape_cast %29 : vector<1x1x8x256xf32> to vector<8x256xf32>
    %c5 = arith.constant 5 : index
    %c0_35 = arith.constant 0 : index
    %c0_36 = arith.constant 0 : index
    %31 = vector.load %arg2[%c5, %c0_35, %c0_36] : memref<9x8x8xf32, #tpu.memory_space<vmem>>, vector<1x8x8xf32>
    %32 = vector.shape_cast %31 : vector<1x8x8xf32> to vector<8x8xf32>
    %cst_37 = arith.constant dense<0.000000e+00> : vector<8x256xf32>
    %33 = tpu.matmul %32, %30, %cst_37 {dimension_numbers = #tpu.dot_dimension_numbers<[1], [0], [0], [1], [0, 0, 1, 1], [], []>} : vector<8x8xf32>, vector<8x256xf32>, vector<8x256xf32> -> vector<8x256xf32>
    %34 = arith.addf %28, %33 : vector<8x256xf32>
    %c0_38 = arith.constant 0 : index
    %c0_39 = arith.constant 0 : index
    %c0_40 = arith.constant 0 : index
    %c64 = arith.constant 64 : index
    %35 = vector.load %arg4[%c0_38, %c0_39, %c0_40, %c64] : memref<1x1x8x352xf32, #tpu.memory_space<vmem>>, vector<1x1x8x256xf32>
    %36 = vector.shape_cast %35 : vector<1x1x8x256xf32> to vector<8x256xf32>
    %c6 = arith.constant 6 : index
    %c0_41 = arith.constant 0 : index
    %c0_42 = arith.constant 0 : index
    %37 = vector.load %arg2[%c6, %c0_41, %c0_42] : memref<9x8x8xf32, #tpu.memory_space<vmem>>, vector<1x8x8xf32>
    %38 = vector.shape_cast %37 : vector<1x8x8xf32> to vector<8x8xf32>
    %cst_43 = arith.constant dense<0.000000e+00> : vector<8x256xf32>
    %39 = tpu.matmul %38, %36, %cst_43 {dimension_numbers = #tpu.dot_dimension_numbers<[1], [0], [0], [1], [0, 0, 1, 1], [], []>} : vector<8x8xf32>, vector<8x256xf32>, vector<8x256xf32> -> vector<8x256xf32>
    %40 = arith.addf %34, %39 : vector<8x256xf32>
    %c0_44 = arith.constant 0 : index
    %c0_45 = arith.constant 0 : index
    %c0_46 = arith.constant 0 : index
    %c65 = arith.constant 65 : index
    %41 = vector.load %arg4[%c0_44, %c0_45, %c0_46, %c65] : memref<1x1x8x352xf32, #tpu.memory_space<vmem>>, vector<1x1x8x256xf32>
    %42 = vector.shape_cast %41 : vector<1x1x8x256xf32> to vector<8x256xf32>
    %c7 = arith.constant 7 : index
    %c0_47 = arith.constant 0 : index
    %c0_48 = arith.constant 0 : index
    %43 = vector.load %arg2[%c7, %c0_47, %c0_48] : memref<9x8x8xf32, #tpu.memory_space<vmem>>, vector<1x8x8xf32>
    %44 = vector.shape_cast %43 : vector<1x8x8xf32> to vector<8x8xf32>
    %cst_49 = arith.constant dense<0.000000e+00> : vector<8x256xf32>
    %45 = tpu.matmul %44, %42, %cst_49 {dimension_numbers = #tpu.dot_dimension_numbers<[1], [0], [0], [1], [0, 0, 1, 1], [], []>} : vector<8x8xf32>, vector<8x256xf32>, vector<8x256xf32> -> vector<8x256xf32>
    %46 = arith.addf %40, %45 : vector<8x256xf32>
    %c0_50 = arith.constant 0 : index
    %c0_51 = arith.constant 0 : index
    %c0_52 = arith.constant 0 : index
    %c66 = arith.constant 66 : index
    %47 = vector.load %arg4[%c0_50, %c0_51, %c0_52, %c66] : memref<1x1x8x352xf32, #tpu.memory_space<vmem>>, vector<1x1x8x256xf32>
    %48 = vector.shape_cast %47 : vector<1x1x8x256xf32> to vector<8x256xf32>
    %c8 = arith.constant 8 : index
    %c0_53 = arith.constant 0 : index
    %c0_54 = arith.constant 0 : index
    %49 = vector.load %arg2[%c8, %c0_53, %c0_54] : memref<9x8x8xf32, #tpu.memory_space<vmem>>, vector<1x8x8xf32>
    %50 = vector.shape_cast %49 : vector<1x8x8xf32> to vector<8x8xf32>
    %cst_55 = arith.constant dense<0.000000e+00> : vector<8x256xf32>
    %51 = tpu.matmul %50, %48, %cst_55 {dimension_numbers = #tpu.dot_dimension_numbers<[1], [0], [0], [1], [0, 0, 1, 1], [], []>} : vector<8x8xf32>, vector<8x256xf32>, vector<8x256xf32> -> vector<8x256xf32>
    %52 = arith.addf %46, %51 : vector<8x256xf32>
    %c0_56 = arith.constant 0 : index
    %c0_57 = arith.constant 0 : index
    %53 = vector.load %arg3[%c0_56, %c0_57] : memref<8x1xf32, #tpu.memory_space<vmem>>, vector<8x1xf32>
    %54 = vector.broadcast %53 : vector<8x1xf32> to vector<8x256xf32>
    %55 = arith.addf %52, %54 : vector<8x256xf32>
    %c0_58 = arith.constant 0 : index
    %c0_59 = arith.constant 0 : index
    %c0_60 = arith.constant 0 : index
    %56 = vector.load %arg5[%c0_58, %c0_59, %c0_60] : memref<1x8x256xf32, #tpu.memory_space<vmem>>, vector<1x8x256xf32>
    %57 = vector.shape_cast %56 : vector<1x8x256xf32> to vector<8x256xf32>
    %58 = vector.shape_cast %55 : vector<8x256xf32> to vector<1x8x256xf32>
    tpu.vector_store %arg5[%c0_58, %c0_59, %c0_60], %58 {strides = array<i32>} : memref<1x8x256xf32, #tpu.memory_space<vmem>>, vector<1x8x256xf32>,
    return
  }
  func.func @transform_0(%arg0: i32, %arg1: i32) -> (i32, i32, i32) {
    %c0_i32 = arith.constant 0 : i32
    %c0_i32_0 = arith.constant 0 : i32
    %c0_i32_1 = arith.constant 0 : i32
    %c0_i32_2 = arith.constant 0 : i32
    return %c0_i32, %c0_i32_0, %c0_i32_1 : i32, i32, i32
  }
  func.func @transform_1(%arg0: i32, %arg1: i32) -> (i32, i32) {
    %c0_i32 = arith.constant 0 : i32
    %c0_i32_0 = arith.constant 0 : i32
    %c0_i32_1 = arith.constant 0 : i32
    return %c0_i32, %c0_i32_0 : i32, i32
  }
  func.func @transform_2(%arg0: i32, %arg1: i32) -> (i32, i32, i32, i32) {
    %c0_i32 = arith.constant 0 : i32
    %c0_i32_0 = arith.constant 0 : i32
    %c0_i32_1 = arith.constant 0 : i32
    return %arg0, %arg1, %c0_i32, %c0_i32_0 : i32, i32, i32, i32
  }
  func.func @transform_3(%arg0: i32, %arg1: i32) -> (i32, i32, i32) {
    %c0_i32 = arith.constant 0 : i32
    %c0_i32_0 = arith.constant 0 : i32
    return %arg0, %c0_i32, %arg1 : i32, i32, i32
  }
}

</mosaic_0001>

<bundles_post_ra>
// kernel: tpu_custom_call.1
= control target key start
LH: loop header
LB: loop body
LE: loop exit
PB: predicated region body
PF: predicated region fallthrough
CT: control target
= control target key end

     0   :  { %8 = vsyncpa [#allocation3], 0  ;;  %s1284_s0 = inlined_call_operand.vmem [shape: f32[9,8,8], index: 0, kind: input, shape index: {}]   ;;  %s1285_s1 = inlined_call_operand.vmem [shape: f32[8,1], index: 1, kind: input, shape index: {}]   ;;  %s1286_s2 = inlined_call_operand.vmem [shape: f32[2,2,8,352], index: 2, kind: input, shape index: {}]   ;;  %s1287_s3 = inlined_call_operand.hbm [shape: f32[2,8,512], index: 3, kind: output, shape index: {}]  }
   0x1   :  { %10 = vsyncpa [#allocation3 + $0x1], 0  ;;  %s1110_s12 = smov 0   ;;  %s1112_s13 = smov 0  }
   0x2   :  { %s1114_s14 = smov 0   ;;  %s1116_s15 = smov 0  }
   0x3   :  { %s1118_s16 = smov 0   ;;  %s1120_s17 = smov 0  }
   0x4   :  { %s1122_s18 = smov 0   ;;  %s1124_s19 = smov 0  }
   0x5 LB: > { %s822_s20 = sadd.s32 4294967295, %s1079_s19   ;;  %s823_s21 = sadd.s32 4294967294, %s1079_s19   ;;  %s1079_s19 = sphi %s1124_s19, %s16_s19   ;;  %s1075_s18 = sphi %s1122_s18, %s1296_s18   ;;  %s1071_s17 = sphi %s1120_s17, %s1295_s17   ;;  %s1067_s16 = sphi %s1118_s16, %s1294_s16   ;;  %s1063_s15 = sphi %s1116_s15, %s1293_s15   ;;  %s1059_s14 = sphi %s1114_s14, %s1292_s14   ;;  %s1055_s13 = sphi %s1112_s13, %s1291_s13   ;;  %s1051_s12 = sphi %s1110_s12, %s1290_s12  }
   0x6   : > { %s25_s22 = sadd.s32 1, %s1071_s17  ;;  %s28_s23 = sadd.s32 1, %s1075_s18 }
   0x7   : > { %p26_p0 = scmp.ge.s32.totalorder %s25_s22, 2  ;;  %p117_p1 = scmp.ne.s32.totalorder %s1059_s14, %s1055_s13 }
   0x8   : > { %p118_p2 = scmp.eq.s32.totalorder %s822_s20, 3  ;;  %p123_p5 = scmp.ne.s32.totalorder %s1055_s13, %s1051_s12 }
   0x9   : > { %s1298_s22 = smov (%p26_p0, %s25_s22), 0  ;;  %s1300_s23 = smov (!%p26_p0, %s28_s23), %s1075_s18 }
   0xa   : > { %s103_s24 = ssub.s32 %s1071_s17, %s1298_s22  ;;  %p1161_p3 = por %p118_p2, %p117_p1 }
   0xb   : > { %p30_p4 = scmp.ge.s32.totalorder %s1300_s23, 2  ;;  %p124_p6 = scmp.eq.s32.totalorder %s823_s21, 3 }
   0xc   : > { %p826_p7 = scmp.ge.s32.totalorder %s1079_s19, 1  ;;  %p160_p9 = scmp.lt.s32.totalorder %s1079_s19, 5 }
   0xd   : > { %s1302_s23 = smov (%p30_p4, %s1300_s23), 0  ;;  %p1170_p8 = por %p124_p6, %p123_p5 }
   0xe   : > { %s102_s27 = ssub.s32 %s1075_s18, %s1302_s23  ;;  %s107_s28 = sadd.s32 1, %s1059_s14 }
   0xf   : > { %s104_s29 = sor.u32 %s103_s24, %s102_s27  ;;  %p161_p10 = pnand %p826_p7, %p160_p9 }
  0x10   : > { %p105_p11 = scmp.eq.s32.totalorder %s104_s29, 0  ;;  %p188_p12 = scmp.lt.s32.totalorder (!%p161_p10), %s1067_s16, 1 }
  0x11   : > { %164 = sbr.rel (%p161_p10) target bundleno = 326 (0x146), region = 32  ;;  %p190_p13 = scmp.lt.s32.totalorder (!%p161_p10), %s1063_s15, 1 }
  0x12   : > { %s1179_s30 = scalar_select %p105_p11, %s1059_s14, %s107_s28  }
  0x13   : > { %s1081_s21 = smov (!%p161_p10), 126   ;;  %s1082_s24 = smov (!%p161_p10), 127  }
  0x14   : > { %s1083_s27 = smov (!%p161_p10), 96   ;;  %s1084_s28 = smov (!%p161_p10), 95  }
  0x15   : > { %s1085_s29 = smov (!%p161_p10), 94  }
  0x16   : > { %s189_s4 = scalar_select %p188_p12, %s1067_s16, 1  ;;  %vm218_vm0 = vcmask 64512   ;;  %v200_v4 = vld [vmem:[%s1284_s0] sm:$0xff]  ;;  %vm371_vm1 = vcmask 785408   ;;  %v837_v8 = vld [vmem:[%s1284_s0 + $0x18] sm:$0xff]  ;;  %vm487_vm2 = vcmask 769024  }
  0x17   : > { %s191_s5 = scalar_select %p190_p13, %s1063_s15, 1  ;;  %v843_v15 = vld [vmem:[%s1284_s0 + $0x28] sm:$0xff]  ;;  %vm213_vm3 = vcmask 1039360   ;;  %vm313_vm4 = vcmask 1031168   ;;  %v834_v30 = vld [vmem:[%s1284_s0 + $0x10] sm:$0xff]  ;;  %v711_v31 = vld [vmem:[%s1285_s1] sm:$0xff] }
  0x18   : > { %s862_s6 = smul.u32 6, %s189_s4  ;;  %s1086_s4 = smov 64   ;;  %v829_v23 = vld [vmem:[%s1284_s0 + $0x8] sm:$0xff]  ;;  %v1089_v33 = vmov 0   ;;  %vm429_vm5 = vcmask 777216   ;;  %v840_v38 = vld [vmem:[%s1284_s0 + $0x20] sm:$0xff] }
  0x19   : > { %s861_s7 = smul.u32 3, %s191_s5  ;;  %s1087_s5 = smov 63   ;;  %983 = vset.pattern.permute.xlu1 %v1089_v33  ;;  %984 = vset.pattern.permute.xlu0 %v1089_v33  ;;  %vm545_vm6 = vcmask 523264   ;;  %vm661_vm7 = vcmask 506880   ;;  %v846_v49 = vld [vmem:[%s1284_s0 + $0x30] sm:$0xff]  ;;  %vm603_vm8 = vcmask 515072  }
  0x1a   : > { %v849_v57 = vld [vmem:[%s1284_s0 + $0x38] sm:$0xff]  ;;  %v852_v60 = vld [vmem:[%s1284_s0 + $0x40] sm:$0xff] }
  0x1b   : > { %s194_s8 = sadd.s32 %s862_s6, %s861_s7  ;;  %s1088_s6 = smov 62  }
  0x1c   : > { %s828_s9 = sshll.u32 %s194_s8, 3 }
  0x1d   : > { %s196_s20 = scalar_lea.vmem %s1286_s2, %s828_s9 }
  0x1e   : > { %v198_v0 = vld [vmem:[%s196_s20] sm:$0xff]  ;;  %v199_v1 = vld [vmem:[%s196_s20 + $0x8] sm:$0xff]  ;;  %v201_v3 = vld [vmem:[%s196_s20 + $0x10] sm:$0xff] }
  0x1f   : > { %v948_v2 = vpack.i.bf16 %v199_v1, %v198_v0  ;;  %280 = vmatpush.msra.mxu2 %v198_v0  ;;  %300 = vmatpush.msra.mxu3 %v199_v1 }
  0x20   : > { %832 = vmatmul.msk.f32.vlgmr.msra.gmra.mxu2 %vm218_vm0, %v200_v4  ;;  %833 = vmatmul.msk.f32.vlgmr.msra.gmra.mxu3 %vm218_vm0, %v200_v4 }
  0x21   : > { %949 = vrot.lane.b32.xlu1 %v948_v2, %s1081_s21  ;;  %944 = vrot.lane.b32.xlu0 %v948_v2, %s1082_s24 }
  0x22   : > { %954 = vrot.lane.b32.xlu2 %v948_v2, %s1083_s27 }
  0x29   : > { %311 = vrot.lane.b32.xlu1 %v201_v3, %s1081_s21  ;;  %211 = vrot.lane.b32.xlu0 %v201_v3, %s1082_s24  ;;  %s856_s21 = sshll.u32 %s1063_s15, 1  ;;  %s857_s24 = sshll.u32 %s1067_s16, 2 }
  0x2a   : > { %369 = vrot.lane.b32.xlu2 %v201_v3, %s1083_s27  ;;  %s185_s27 = sand.u32 1, %s1055_s13  }
  0x2b   : > { %s722_s9 = scalar_lea.sflag [#allocation3], %s185_s27 }
  0x31   : > { %959 = vrot.lane.b32.xlu0 %v948_v2, %s1084_s28  ;;  %427 = vrot.lane.b32.xlu1 %v201_v3, %s1084_s28  ;;  %s733_s28 = sadd.s32 %s857_s24, %s856_s21  ;;  %s1005_s24 = scalar_lea.hbm %s1287_s3, 64 }
  0x32   : > { %964 = vrot.lane.b32.xlu2 %v948_v2, %s1085_s29 }
  0x39   : > { %485 = vrot.lane.b32.xlu0 %v201_v3, %s1085_s29  ;;  %969 = vrot.lane.b32.xlu1 %v948_v2, %s1086_s4  ;;  %s827_s29 = sshll.u32 %s185_s27, 4 }
  0x3a   : > { %543 = vrot.lane.b32.xlu2 %v201_v3, %s1086_s4  ;;  %s858_s4 = sshll.u32 %s733_s28, 3  ;;  %s187_s16 = scalar_lea.vmem [#allocation2], %s827_s29 }
  0x3b   : > { %s735_s15 = scalar_lea.hbm %s1287_s3, %s858_s4  ;;  %s737_s7 = sshll.u32 %s187_s16, 4  ;;  %s738_s7 = int_to_ptr.vmem [resolvable:$true] %s737_s7 }
  0x3c   : > { %s739_s8 = sshll.u32 %s735_s15, 4  ;;  %s740_s8 = int_to_ptr.hbm [resolvable:$true] %s739_s8 }
  0x3d   : > { %s999_s10 = sshra.s32 %s740_s8, 4  ;;  %s1000_s10 = int_to_ptr.hbm [resolvable:$true] %s999_s10 }
  0x3e   : > { %s1001_s11 = scalar_lea.hbm %s1000_s10, 16  ;;  %p1006_p4 = scmp.lt.s32.totalorder %s1000_s10, %s1287_s3 }
  0x3f   : > { %p1002_p0 = scmp.ne.s32.totalorder %s1000_s10, %s1001_s11  ;;  %p1007_p5 = scmp.lt.s32.totalorder %s1005_s24, %s1001_s11 }
  0x41   : > { %974 = vrot.lane.b32.xlu0 %v948_v2, %s1087_s5  ;;  %601 = vrot.lane.b32.xlu1 %v201_v3, %s1087_s5  ;;  %p1003_p1 = pnand %p1002_p0, %p1161_p3  ;;  %p1008_p6 = por %p1007_p5, %p1006_p4 }
  0x42   : > { %979 = vrot.lane.b32.xlu2 %v948_v2, %s1088_s6 }
  0x43   : > { %p1004_p2 = pneg %p1003_p1 }
  0x45   : > { %p1009_p7 = pnand %p1008_p6, %p1004_p2 }
  0x49   : > { %659 = vrot.lane.b32.xlu0 %v201_v3, %s1088_s6  ;;  %714 = vperm.xlu1 %983, %v711_v31  }
  0x7c   : > { %v955_v5 = vpop.permute.xlu2 %954 }
  0x7d   : > { %v957_v6 = vunpack.i.h.bf16 %v955_v5  ;;  %v956_v7 = vunpack.i.l.bf16 %v955_v5 }
  0x7f   : > { %v372_v9 = vsel %vm371_vm1, %v956_v7, %v957_v6 }
  0x80   : > { %394 = vmatpush.msrb.mxu2 %v372_v9 }
  0x81   : > { %838 = vmatmul.msk.f32.vlgmr.msrb.gmra.mxu2 %vm218_vm0, %v837_v8 }
  0x84   : > { %v370_v10 = vpop.permute.xlu2 %369 }
  0x85   : > { %v373_v11 = vsel %vm371_vm1, %v957_v6, %v370_v10 }
  0x86   : > { %414 = vmatpush.msrb.mxu3 %v373_v11 }
  0x87   : > { %839 = vmatmul.msk.f32.vlgmr.msrb.gmra.mxu3 %vm218_vm0, %v837_v8 }
  0x8c   : > { %v965_v12 = vpop.permute.xlu2 %964 }
  0x8d   : > { %v967_v13 = vunpack.i.h.bf16 %v965_v12  ;;  %v966_v14 = vunpack.i.l.bf16 %v965_v12 }
  0x8f   : > { %v488_v16 = vsel %vm487_vm2, %v966_v14, %v967_v13 }
  0x90   : > { %510 = vmatpush.msra.mxu2 %v488_v16 }
  0x91   : > { %844 = vmatmul.msk.f32.vlgmr.msra.gmra.mxu2 %vm218_vm0, %v843_v15 }
  0x93   : > { %v950_v17 = vpop.permute.xlu1 %949  ;;  %v945_v18 = vpop.permute.xlu0 %944 }
  0x94   : > { %v952_v19 = vunpack.i.h.bf16 %v950_v17  ;;  %v951_v20 = vunpack.i.l.bf16 %v950_v17  ;;  %v947_v21 = vunpack.i.h.bf16 %v945_v18  ;;  %v946_v22 = vunpack.i.l.bf16 %v945_v18  ;;  %v544_v32 = vpop.permute.xlu2 %543 }
  0x96   : > { %v214_v24 = vsel %vm213_vm3, %v946_v22, %v947_v21  ;;  %v314_v25 = vsel %vm313_vm4, %v951_v20, %v952_v19 }
  0x97   : > { %237 = vmatpush.msra.mxu0 %v214_v24 }
  0x98   : > { %830 = vmatmul.msk.f32.vlgmr.msra.gmra.mxu0 %vm218_vm0, %v829_v23 }
  0x99   : > { %336 = vmatpush.msrb.mxu0 %v314_v25 }
  0x9b   : > { %v312_v26 = vpop.permute.xlu1 %311  ;;  %v212_v27 = vpop.permute.xlu0 %211 }
  0x9c   : > { %v215_v28 = vsel %vm213_vm3, %v947_v21, %v212_v27  ;;  %v315_v29 = vsel %vm313_vm4, %v952_v19, %v312_v26  ;;  %v980_v41 = vpop.permute.xlu2 %979 }
  0x9d   : > { %257 = vmatpush.msra.mxu1 %v215_v28  ;;  %v982_v42 = vunpack.i.h.bf16 %v980_v41  ;;  %v981_v43 = vunpack.i.l.bf16 %v980_v41 }
  0x9e   : > { %831 = vmatmul.msk.f32.vlgmr.msra.gmra.mxu1 %vm218_vm0, %v829_v23 }
  0x9f   : > { %356 = vmatpush.msrb.mxu1 %v315_v29  ;;  %v662_v52 = vsel %vm661_vm7, %v981_v43, %v982_v42 }
  0xa0   : > { %835 = vmatmul.msk.f32.vlgmr.msrb.gmra.mxu0 %vm218_vm0, %v834_v30 }
  0xa3   : > { %v960_v34 = vpop.permute.xlu0 %959  ;;  %v428_v35 = vpop.permute.xlu1 %427 }
  0xa4   : > { %v962_v36 = vunpack.i.h.bf16 %v960_v34  ;;  %v961_v37 = vunpack.i.l.bf16 %v960_v34  ;;  %v282_v2 = vpop.f32.mrf.mxu2  ;;  %v302_v3 = vpop.f32.mrf.mxu3 }
  0xa6   : > { %v431_v39 = vsel %vm429_vm5, %v962_v36, %v428_v35  ;;  %836 = vmatmul.msk.f32.vlgmr.msrb.gmra.mxu1 %vm218_vm0, %v834_v30  ;;  %v430_v40 = vsel %vm429_vm5, %v961_v37, %v962_v36 }
  0xa7   : > { %452 = vmatpush.msra.mxu0 %v430_v40  ;;  %472 = vmatpush.msra.mxu1 %v431_v39 }
  0xa8   : > { %841 = vmatmul.msk.f32.vlgmr.msra.gmra.mxu0 %vm218_vm0, %v840_v38 }
  0xab   : > { %v486_v44 = vpop.permute.xlu0 %485  ;;  %v970_v45 = vpop.permute.xlu1 %969 }
  0xac   : > { %v489_v46 = vsel %vm487_vm2, %v967_v13, %v486_v44  ;;  %v972_v47 = vunpack.i.h.bf16 %v970_v45  ;;  %v971_v48 = vunpack.i.l.bf16 %v970_v45 }
  0xad   : > { %530 = vmatpush.msra.mxu3 %v489_v46 }
  0xae   : > { %842 = vmatmul.msk.f32.vlgmr.msra.gmra.mxu1 %vm218_vm0, %v840_v38  ;;  %845 = vmatmul.msk.f32.vlgmr.msra.gmra.mxu3 %vm218_vm0, %v843_v15  ;;  %v547_v50 = vsel %vm545_vm6, %v972_v47, %v544_v32  ;;  %v546_v51 = vsel %vm545_vm6, %v971_v48, %v972_v47 }
  0xaf   : > { %568 = vmatpush.msrb.mxu0 %v546_v51  ;;  %588 = vmatpush.msrb.mxu1 %v547_v50 }
  0xb0   : > { %847 = vmatmul.msk.f32.vlgmr.msrb.gmra.mxu0 %vm218_vm0, %v846_v49 }
  0xb1   : > { %684 = vmatpush.msra.mxu0 %v662_v52 }
  0xb3   : > { %v975_v53 = vpop.permute.xlu0 %974  ;;  %v602_v54 = vpop.permute.xlu1 %601 }
  0xb4   : > { %v977_v55 = vunpack.i.h.bf16 %v975_v53  ;;  %v976_v56 = vunpack.i.l.bf16 %v975_v53 }
  0xb6   : > { %v605_v58 = vsel %vm603_vm8, %v977_v55, %v602_v54  ;;  %848 = vmatmul.msk.f32.vlgmr.msrb.gmra.mxu1 %vm218_vm0, %v846_v49  ;;  %v604_v59 = vsel %vm603_vm8, %v976_v56, %v977_v55 }
  0xb7   : > { %626 = vmatpush.msrb.mxu2 %v604_v59  ;;  %646 = vmatpush.msrb.mxu3 %v605_v58 }
  0xb8   : > { %850 = vmatmul.msk.f32.vlgmr.msrb.gmra.mxu2 %vm218_vm0, %v849_v57  ;;  %851 = vmatmul.msk.f32.vlgmr.msrb.gmra.mxu3 %vm218_vm0, %v849_v57 }
  0xb9   : > { %853 = vmatmul.msk.f32.vlgmr.msra.gmra.mxu0 %vm218_vm0, %v852_v60 }
  0xbb   : > { %v660_v61 = vpop.permute.xlu0 %659  ;;  %v715_v31 = vpop.permute.xlu1 %714 }
  0xbc   : > { %v663_v62 = vsel %vm661_vm7, %v982_v42, %v660_v61 }
  0xbd   : > { %704 = vmatpush.msra.mxu1 %v663_v62 }
  0xbe   : > { %854 = vmatmul.msk.f32.vlgmr.msra.gmra.mxu1 %vm218_vm0, %v852_v60 }
 0x104   : > { %v396_v6 = vpop.f32.mrf.mxu2 }
 0x10a   : > { %v416_v8 = vpop.f32.mrf.mxu3 }
 0x114   : > { %v512_v16 = vpop.f32.mrf.mxu2 }
 0x115   : > { %v239_v63 = vpop.f32.mrf.mxu0 }
 0x116   : > { %v283_v7 = vadd.f32 %v282_v2, %v239_v63 }
 0x11b   : > { %v259_v0 = vpop.f32.mrf.mxu1 }
 0x11c   : > { %v303_v10 = vadd.f32 %v302_v3, %v259_v0 }
 0x11d   : > { %v338_v1 = vpop.f32.mrf.mxu0 }
 0x11e   : > { %v361_v11 = vadd.f32 %v338_v1, %v283_v7 }
 0x120   : > { %v419_v13 = vadd.f32 %v396_v6, %v361_v11 }
 0x123   : > { %v358_v4 = vpop.f32.mrf.mxu1 }
 0x124   : > { %v362_v12 = vadd.f32 %v358_v4, %v303_v10 }
 0x125   : > { %v454_v5 = vpop.f32.mrf.mxu0 }
 0x126   : > { %v420_v14 = vadd.f32 %v416_v8, %v362_v12  ;;  %v477_v18 = vadd.f32 %v454_v5, %v419_v13 }
 0x128   : > { %v535_v22 = vadd.f32 %v512_v16, %v477_v18 }
 0x12b   : > { %v474_v9 = vpop.f32.mrf.mxu1 }
 0x12c   : > { %v478_v19 = vadd.f32 %v474_v9, %v420_v14 }
 0x12d   : > { %v570_v15 = vpop.f32.mrf.mxu0 }
 0x12e   : > { %v593_v23 = vadd.f32 %v570_v15, %v535_v22 }
 0x131   : > { %v532_v17 = vpop.f32.mrf.mxu3 }
 0x132   : > { %v536_v21 = vadd.f32 %v532_v17, %v478_v19 }
 0x133   : > { %v590_v20 = vpop.f32.mrf.mxu1 }
 0x134   : > { %v594_v24 = vadd.f32 %v590_v20, %v536_v21 }
 0x136   : > { %v686_v25 = vpop.f32.mrf.mxu0 }
 0x13b   : > { %v628_v26 = vpop.f32.mrf.mxu2  ;;  %v648_v27 = vpop.f32.mrf.mxu3 }
 0x13c   : > { %v651_v28 = vadd.f32 %v628_v26, %v593_v23  ;;  %v652_v29 = vadd.f32 %v648_v27, %v594_v24  ;;  %v706_v30 = vpop.f32.mrf.mxu1 }
 0x13e   : > { %v709_v32 = vadd.f32 %v686_v25, %v651_v28  ;;  %v710_v33 = vadd.f32 %v706_v30, %v652_v29 }
 0x140   : > { %v717_v34 = vadd.f32 %v715_v31, %v709_v32  ;;  %v718_v35 = vadd.f32 %v715_v31, %v710_v33 }
 0x142   : > { %719 = vst [vmem:[%s187_s16] sm:$0xff] %v717_v34 }
 0x143   : > { %720 = vst [vmem:[%s187_s16 + $0x8] sm:$0xff] %v718_v35 }
 0x144   : > { %1012 = shalt.err (!%p1009_p7)
}
 0x145   : > { %863 = dma.vmem_to_hbm [thread:$0]  (%p1161_p3), %s738_s7, 256, %s740_s8, %s722_s9  }
 0x146 PF: > { %p869_p9 = scmp.ge.s32.totalorder %s1079_s19, 2  ;;  %s751_s27 = sand.u32 1, %s1051_s12  }
 0x147   : > { %s752_s4 = scalar_lea.sflag [#allocation3], %s751_s27 }
 0x148   : > { %p866_p10 = pnand %p869_p9, %p1170_p8 }
 0x14a   : > { %p867_p11 = pneg %p866_p10 }
 0x14c   : > { %1046 = dma.done.wait (%p867_p11), %s752_s4, 256  }
 0x14d   : > { %1048 = vsyncadd (%p867_p11), %s752_s4, 4294967040  ;;  %s16_s19 = sadd.s32 1, %s1079_s19   ;;  %s1290_s12 = smov %s1055_s13 }
 0x14e   : > { %p13_p12 = scmp.ge.s32.totalorder %s16_s19, 6   ;;  %s1291_s13 = smov %s1059_s14 }
 0x14f   : > { %s1292_s14 = smov %s1179_s30  ;;  %s1293_s15 = smov %s1071_s17 }
 0x150   : > { %s1294_s16 = smov %s1075_s18  ;;  %s1295_s17 = smov %s1298_s22 }
 0x151   : > { %s1296_s18 = smov %s1302_s23  ;;  %15 = sbr.rel (!%p13_p12) target bundleno = 5 (0x5), region = 75 }
 0x156   :  { %758 = vsyncpa [#allocation3], 1 }
 0x157   :  { %760 = vsyncpa [#allocation3 + $0x1], 1 }

</bundles_post_ra>
